<compile_context>
chip_gen: v7x
topology: tpu7x:2x2x1
jax: 0.10.0
libtpu: 0.0.40
codegen_flags: <defaults>
</compile_context>

<pallas_src>
import functools

import jax
import jax.numpy as jnp
from jax.experimental import pallas as pl
from jax.experimental.pallas import tpu as pltpu


# ------------------------------ fused kernel -------------------------------- #

def _block_kernel(x_ref, planes_ref, se_ref, o_ref, *, H, W, K, Cexp):
    HW = H * W
    Nb, Cin, _ = x_ref.shape
    Cout = o_ref.shape[1]
    inv_hw = 1.0 / float(HW)

    # Static offsets into the packed parameter-plane slab (each plane is (Cmax, HW)).
    off_w1 = 0                         # Cin planes: expand weight columns (BN1 folded)
    off_b1 = off_w1 + Cin              # 1 plane:  b1
    off_dw = off_b1 + 1                # K*K planes: depthwise weight * halo mask (BN2 folded)
    off_b2 = off_dw + K * K            # 1 plane:  b2
    off_pr = off_b2 + 1                # Cexp+Cin planes: [w3 | w_skip] columns (BN folded)
    off_bpr = off_pr + Cexp + Cin      # 1 plane:  b3 + b_skip

    wse1 = se_ref[0]                   # (Cmax, E)  w_se1 with SE-BN scale folded
    bse = se_ref[1]                    # (Cmax, E)  row-replicated b_se
    wse2 = se_ref[2]                   # (Cmax, E)  w_se2^T

    for s in range(Nb):                # static unroll over samples in this block
        x = x_ref[s].astype(jnp.float32)                       # (Cin, HW), lanes dense

        # ---- 1x1 expand + folded BN1 + ReLU (bias-plane-initialized accumulator) ----
        acc = planes_ref[off_b1]
        for ci in range(Cin):
            acc = acc + planes_ref[off_w1 + ci] * x[ci:ci + 1, :]   # sublane bcast only
        y1 = jnp.maximum(acc, 0.0)                              # (Cmax, HW)

        # ---- depthwise KxK (stride 1, zero pad) + folded BN2 + ReLU ----
        # Each tap: static lane-roll of flattened HW (XLU) * precomputed weight*mask
        # plane -> a single FMA per tap; center tap needs no roll.
        acc = planes_ref[off_b2]
        for kh in range(K):
            for kw in range(K):
                t = kh * K + kw
                delta = (kh - K // 2) * W + (kw - K // 2)
                shifted = y1 if delta == 0 else pltpu.roll(y1, shift=(-delta) % HW, axis=1)
                acc = acc + shifted * planes_ref[off_dw + t]
        y2 = jnp.maximum(acc, 0.0)                              # (Cmax, HW)

        # ---- SE: avg-pool -> fc+BN -> ReLU -> fc -> hardsigmoid -> scale ----
        pooled = jnp.sum(y2, axis=1, keepdims=True) * inv_hw                 # (Cmax, 1)
        h = jnp.sum(pooled * wse1, axis=0, keepdims=True) + bse[0:1, :]      # (1, E)
        h = jnp.maximum(h, 0.0)
        g = jnp.sum(wse2 * h, axis=1, keepdims=True)                         # (Cmax, 1)
        g = jnp.clip(g * (1.0 / 6.0) + 0.5, 0.0, 1.0)                        # hardsigmoid
        y3 = y2 * g

        # ---- project 1x1 + BN3, skip 1x1 + BN (concatenated columns), add, ReLU ----
        acc = planes_ref[off_bpr]
        for c in range(Cexp):
            acc = acc + planes_ref[off_pr + c] * y3[c:c + 1, :]
        for c in range(Cin):
            acc = acc + planes_ref[off_pr + Cexp + c] * x[c:c + 1, :]
        o_ref[s] = jnp.maximum(acc[:Cout, :], 0.0).astype(o_ref.dtype)   # dense-lane store


# --------------------- one-time parameter preparation ----------------------- #

def prepare_block_params(p, H, W, K):
    """Fold BN into weights, pre-broadcast weight columns along HW, fold the
    depthwise weights into the zero-padding halo masks, and pack everything into
    two slabs.  Run ONCE at parameter-load time (outside the per-call path)."""
    Cin, Cexp = p["w1"].shape
    Cout = p["w3"].shape[1]
    E = p["w_se1"].shape[1]
    HW = H * W
    Cmax = max(Cexp, Cout)

    def rows(a):                          # zero-pad a (c, X) plane to (Cmax, X)
        return jnp.pad(a, ((0, Cmax - a.shape[0]), (0, 0)))

    w1f = (p["w1"] * p["s1"]).T.astype(jnp.float32)                      # (Cexp, Cin)
    w2f = (p["w2"] * p["s2"]).T.astype(jnp.float32)                      # (Cexp, K*K)
    wprf = jnp.concatenate([(p["w3"] * p["s3"]).T,
                            (p["w_skip"] * p["s_skip"]).T],
                           axis=1).astype(jnp.float32)                   # (Cout, Cexp+Cin)

    h_idx = jnp.repeat(jnp.arange(H), W)
    w_idx = jnp.tile(jnp.arange(W), H)

    planes = []
    for ci in range(Cin):                                                # expand columns
        planes.append(rows(jnp.broadcast_to(w1f[:, ci:ci + 1], (Cexp, HW))))
    planes.append(rows(jnp.broadcast_to(p["b1"].reshape(Cexp, 1), (Cexp, HW))))
    for kh in range(K):                                                  # dw weight*halo-mask
        dh = kh - K // 2
        for kw in range(K):
            dw = kw - K // 2
            t = kh * K + kw
            valid = ((h_idx + dh >= 0) & (h_idx + dh < H) &
                     (w_idx + dw >= 0) & (w_idx + dw < W)).astype(jnp.float32)
            planes.append(rows(w2f[:, t:t + 1] * valid[None, :]))
    planes.append(rows(jnp.broadcast_to(p["b2"].reshape(Cexp, 1), (Cexp, HW))))
    for c in range(Cexp + Cin):                                          # project|skip columns
        planes.append(rows(jnp.broadcast_to(wprf[:, c:c + 1], (Cout, HW))))
    planes.append(rows(jnp.broadcast_to((p["b3"] + p["b_skip"]).reshape(Cout, 1), (Cout, HW))))
    plane_slab = jnp.stack(planes, axis=0)                               # (NP, Cmax, HW)

    se_slab = jnp.stack([
        rows((p["w_se1"] * p["s_se"]).astype(jnp.float32)),              # SE-BN folded
        rows(jnp.broadcast_to(p["b_se"], (Cexp, E)).astype(jnp.float32)),
        rows(p["w_se2"].T.astype(jnp.float32)),
    ], axis=0)                                                           # (3, Cmax, E)

    cfg = dict(K=K, Cexp=Cexp, Cout=Cout)
    return plane_slab, se_slab, cfg


# ------------------------------ wrapper ------------------------------------- #

@functools.partial(jax.jit, static_argnames=("K", "Cexp", "Cout", "nb"))
def block_forward(x_nchw, plane_slab, se_slab, *, K, Cexp, Cout, nb=None):
    N, Cin, H, W = x_nchw.shape
    HW = H * W
    NP, Cmax, _ = plane_slab.shape
    E = se_slab.shape[2]

    if nb is None:
        # >= 2 grid steps whenever N >= 2 so both v7x TensorCores get fed.
        # On v5e/v6e (single TC) pass nb=N for one step covering the whole batch.
        nb = max(1, pl.cdiv(N, 2))
    grid_n = pl.cdiv(N, nb)

    x = x_nchw.reshape(N, Cin, HW)                    # channels-first, free reshape
    if grid_n * nb != N:                              # pad batch so every block is full
        x = jnp.pad(x, ((0, grid_n * nb - N), (0, 0), (0, 0)))

    out = pl.pallas_call(
        functools.partial(_block_kernel, H=H, W=W, K=K, Cexp=Cexp),
        out_shape=jax.ShapeDtypeStruct((grid_n * nb, Cout, HW), x_nchw.dtype),
        grid=(grid_n,),
        in_specs=[
            pl.BlockSpec((nb, Cin, HW), lambda n: (n, 0, 0)),     # activations
            pl.BlockSpec((NP, Cmax, HW), lambda n: (0, 0, 0)),    # packed param planes (grid-invariant)
            pl.BlockSpec((3, Cmax, E), lambda n: (0, 0, 0)),      # packed SE params (grid-invariant)
        ],
        out_specs=pl.BlockSpec((nb, Cout, HW), lambda n: (n, 0, 0)),
        compiler_params=pltpu.CompilerParams(dimension_semantics=("parallel",)),
    )(x, plane_slab, se_slab)

    if grid_n * nb != N:
        out = out[:N]
    return out.reshape(N, Cout, H, W)                 # NCHW, free reshape


# ----------------------------- pure-JAX reference --------------------------- #

def ref_forward(x_nchw, p):
    N, Cin, H, W = x_nchw.shape
    K, pad = 3, 1
    x = x_nchw.astype(jnp.float32)                         # (N, Cin, H, W)

    def bcast(v):                                          # (1, C) -> (1, C, 1, 1)
        return v[0][None, :, None, None]

    # 1x1 expand + BN1 + ReLU
    y = jnp.sum(x[:, :, None, :, :] * p["w1"][None, :, :, None, None], axis=1)
    y = jnp.maximum(y * bcast(p["s1"]) + bcast(p["b1"]), 0.0)

    # depthwise 3x3 (stride 1, zero pad) + BN2 + ReLU
    yp = jnp.pad(y, ((0, 0), (0, 0), (pad, pad), (pad, pad)))
    acc = jnp.zeros_like(y)
    for kh in range(K):
        for kw in range(K):
            acc = acc + yp[:, :, kh:kh + H, kw:kw + W] * p["w2"][kh * K + kw][None, :, None, None]
    y = jnp.maximum(acc * bcast(p["s2"]) + bcast(p["b2"]), 0.0)

    # SE
    pooled = jnp.mean(y, axis=(2, 3))                                  # (N, Cexp)
    h = jnp.sum(pooled[:, :, None] * p["w_se1"][None], axis=1)         # (N, E)
    h = jnp.maximum(h * p["s_se"] + p["b_se"], 0.0)
    g = jnp.sum(h[:, :, None] * p["w_se2"][None], axis=1)              # (N, Cexp)
    g = jnp.clip(g / 6.0 + 0.5, 0.0, 1.0)
    y = y * g[:, :, None, None]

    # project + BN3, skip 1x1 + BN, add, ReLU
    main = jnp.sum(y[:, :, None, :, :] * p["w3"][None, :, :, None, None], axis=1)
    main = main * bcast(p["s3"]) + bcast(p["b3"])
    skip = jnp.sum(x[:, :, None, :, :] * p["w_skip"][None, :, :, None, None], axis=1)
    skip = skip * bcast(p["s_skip"]) + bcast(p["b_skip"])
    return jnp.maximum(main + skip, 0.0)


# ------------------------------- parameters -------------------------------- #

def fold_bn(c, seed):
    # deterministic non-trivial BN params, folded to (scale, bias), shape (1, c)
    gamma = 1.0 + 0.1 * jnp.arange(c, dtype=jnp.float32) + 0.01 * seed
    beta = 0.02 * jnp.arange(c, dtype=jnp.float32) - 0.01 * seed
    mean = 0.05 * jnp.arange(c, dtype=jnp.float32)
    var = 1.0 + 0.03 * jnp.arange(c, dtype=jnp.float32)
    scale = gamma / jnp.sqrt(var + 1e-5)
    bias = beta - mean * scale
    return scale[None, :], bias[None, :]


def make_params(key, Cin, Cexp, Cout, K):
    E = max(Cexp // 4, 8)
    ks = jax.random.split(key, 6)
    p = {}
    p["w1"] = 0.1 * jax.random.normal(ks[0], (Cin, Cexp), jnp.float32)
    p["w2"] = 0.1 * jax.random.normal(ks[1], (K * K, Cexp), jnp.float32)
    p["w3"] = 0.1 * jax.random.normal(ks[2], (Cexp, Cout), jnp.float32)
    p["w_skip"] = 0.1 * jax.random.normal(ks[3], (Cin, Cout), jnp.float32)
    p["w_se1"] = 0.1 * jax.random.normal(ks[4], (Cexp, E), jnp.float32)
    p["w_se2"] = 0.1 * jax.random.normal(ks[5], (E, Cexp), jnp.float32)
    p["s1"], p["b1"] = fold_bn(Cexp, 1)
    p["s2"], p["b2"] = fold_bn(Cexp, 2)
    p["s_se"], p["b_se"] = fold_bn(E, 3)
    p["s3"], p["b3"] = fold_bn(Cout, 4)
    p["s_skip"], p["b_skip"] = fold_bn(Cout, 5)
    return p


if __name__ == "__main__":
    N, Cin, H, W = 2, 4, 16, 16
    Cexp, Cout, K = 8, 8, 3

    key = jax.random.PRNGKey(0)
    kx, kp = jax.random.split(key)
    x = jax.random.normal(kx, (N, Cin, H, W), jnp.float32)   # NCHW, like PyTorch
    params = make_params(kp, Cin, Cexp, Cout, K)

    # BN folding / weight pre-broadcast / slab packing happens ONCE, not per call.
    plane_slab, se_slab, cfg = prepare_block_params(params, H, W, K)
    plane_slab, se_slab = jax.block_until_ready((plane_slab, se_slab))

    out = jax.block_until_ready(block_forward(x, plane_slab, se_slab, **cfg))
    ref = jax.block_until_ready(ref_forward(x, params))

    assert out.shape == (N, Cout, H, W), out.shape
    assert jnp.allclose(out, ref, atol=1e-4, rtol=1e-4), float(jnp.max(jnp.abs(out - ref)))
    print("KERNEL_OK")
</pallas_src>

<mosaic_0001>
module attributes {stable_mosaic.version = 11 : i64} {
  func.func @_block_kernel(%arg0: i32, %arg1: memref<1x4x256xf32, #tpu.memory_space<vmem>>, %arg2: memref<28x8x256xf32, #tpu.memory_space<vmem>>, %arg3: memref<3x8x8xf32, #tpu.memory_space<vmem>>, %arg4: memref<1x8x256xf32, #tpu.memory_space<vmem>>) attributes {dimension_semantics = [#tpu.dimension_semantics<parallel>], iteration_bounds = array<i64: 2>, scalar_prefetch = 0 : i64, scratch_operands = 0 : i64, tpu.core_type = #tpu.core_type<tc>, window_params = [{transform_indices = @transform_0, window_bounds = array<i64: 1, 4, 256>}, {pipeline_mode = #tpu.pipeline_mode<synchronous>, transform_indices = @transform_1, window_bounds = array<i64: 28, 8, 256>}, {pipeline_mode = #tpu.pipeline_mode<synchronous>, transform_indices = @transform_2, window_bounds = array<i64: 3, 8, 8>}, {transform_indices = @transform_3, window_bounds = array<i64: 1, 8, 256>}]} {
    %c0 = arith.constant 0 : index
    %c0_0 = arith.constant 0 : index
    %c0_1 = arith.constant 0 : index
    %0 = vector.load %arg3[%c0, %c0_0, %c0_1] : memref<3x8x8xf32, #tpu.memory_space<vmem>>, vector<1x8x8xf32>
    %1 = vector.shape_cast %0 : vector<1x8x8xf32> to vector<8x8xf32>
    %c1 = arith.constant 1 : index
    %c0_2 = arith.constant 0 : index
    %c0_3 = arith.constant 0 : index
    %2 = vector.load %arg3[%c1, %c0_2, %c0_3] : memref<3x8x8xf32, #tpu.memory_space<vmem>>, vector<1x8x8xf32>
    %3 = vector.shape_cast %2 : vector<1x8x8xf32> to vector<8x8xf32>
    %c2 = arith.constant 2 : index
    %c0_4 = arith.constant 0 : index
    %c0_5 = arith.constant 0 : index
    %4 = vector.load %arg3[%c2, %c0_4, %c0_5] : memref<3x8x8xf32, #tpu.memory_space<vmem>>, vector<1x8x8xf32>
    %5 = vector.shape_cast %4 : vector<1x8x8xf32> to vector<8x8xf32>
    %c0_6 = arith.constant 0 : index
    %c0_7 = arith.constant 0 : index
    %c0_8 = arith.constant 0 : index
    %6 = vector.load %arg1[%c0_6, %c0_7, %c0_8] : memref<1x4x256xf32, #tpu.memory_space<vmem>>, vector<1x4x256xf32>
    %7 = vector.shape_cast %6 : vector<1x4x256xf32> to vector<4x256xf32>
    %c4 = arith.constant 4 : index
    %c0_9 = arith.constant 0 : index
    %c0_10 = arith.constant 0 : index
    %8 = vector.load %arg2[%c4, %c0_9, %c0_10] : memref<28x8x256xf32, #tpu.memory_space<vmem>>, vector<1x8x256xf32>
    %9 = vector.shape_cast %8 : vector<1x8x256xf32> to vector<8x256xf32>
    %c0_11 = arith.constant 0 : index
    %c0_12 = arith.constant 0 : index
    %c0_13 = arith.constant 0 : index
    %10 = vector.load %arg2[%c0_11, %c0_12, %c0_13] : memref<28x8x256xf32, #tpu.memory_space<vmem>>, vector<1x8x256xf32>
    %11 = vector.shape_cast %10 : vector<1x8x256xf32> to vector<8x256xf32>
    %12 = vector.extract_strided_slice %7 {offsets = [0, 0], sizes = [1, 256], strides = [1, 1]} : vector<4x256xf32> to vector<1x256xf32>
    %13 = vector.broadcast %12 : vector<1x256xf32> to vector<8x256xf32>
    %14 = arith.mulf %11, %13 : vector<8x256xf32>
    %15 = arith.addf %9, %14 : vector<8x256xf32>
    %c1_14 = arith.constant 1 : index
    %c0_15 = arith.constant 0 : index
    %c0_16 = arith.constant 0 : index
    %16 = vector.load %arg2[%c1_14, %c0_15, %c0_16] : memref<28x8x256xf32, #tpu.memory_space<vmem>>, vector<1x8x256xf32>
    %17 = vector.shape_cast %16 : vector<1x8x256xf32> to vector<8x256xf32>
    %18 = vector.extract_strided_slice %7 {offsets = [1, 0], sizes = [1, 256], strides = [1, 1]} : vector<4x256xf32> to vector<1x256xf32>
    %19 = vector.broadcast %18 : vector<1x256xf32> to vector<8x256xf32>
    %20 = arith.mulf %17, %19 : vector<8x256xf32>
    %21 = arith.addf %15, %20 : vector<8x256xf32>
    %c2_17 = arith.constant 2 : index
    %c0_18 = arith.constant 0 : index
    %c0_19 = arith.constant 0 : index
    %22 = vector.load %arg2[%c2_17, %c0_18, %c0_19] : memref<28x8x256xf32, #tpu.memory_space<vmem>>, vector<1x8x256xf32>
    %23 = vector.shape_cast %22 : vector<1x8x256xf32> to vector<8x256xf32>
    %24 = vector.extract_strided_slice %7 {offsets = [2, 0], sizes = [1, 256], strides = [1, 1]} : vector<4x256xf32> to vector<1x256xf32>
    %25 = vector.broadcast %24 : vector<1x256xf32> to vector<8x256xf32>
    %26 = arith.mulf %23, %25 : vector<8x256xf32>
    %27 = arith.addf %21, %26 : vector<8x256xf32>
    %c3 = arith.constant 3 : index
    %c0_20 = arith.constant 0 : index
    %c0_21 = arith.constant 0 : index
    %28 = vector.load %arg2[%c3, %c0_20, %c0_21] : memref<28x8x256xf32, #tpu.memory_space<vmem>>, vector<1x8x256xf32>
    %29 = vector.shape_cast %28 : vector<1x8x256xf32> to vector<8x256xf32>
    %30 = vector.extract_strided_slice %7 {offsets = [3, 0], sizes = [1, 256], strides = [1, 1]} : vector<4x256xf32> to vector<1x256xf32>
    %31 = vector.broadcast %30 : vector<1x256xf32> to vector<8x256xf32>
    %32 = arith.mulf %29, %31 : vector<8x256xf32>
    %33 = arith.addf %27, %32 : vector<8x256xf32>
    %cst = arith.constant 0.000000e+00 : f32
    %34 = vector.broadcast %cst : f32 to vector<8x256xf32>
    %35 = arith.maximumf %33, %34 : vector<8x256xf32>
    %c14 = arith.constant 14 : index
    %c0_22 = arith.constant 0 : index
    %c0_23 = arith.constant 0 : index
    %36 = vector.load %arg2[%c14, %c0_22, %c0_23] : memref<28x8x256xf32, #tpu.memory_space<vmem>>, vector<1x8x256xf32>
    %37 = vector.shape_cast %36 : vector<1x8x256xf32> to vector<8x256xf32>
    %c17_i32 = arith.constant 17 : i32
    %38 = tpu.dynamic_rotate %35 by %c17_i32 dim 1 : vector<8x256xf32>, i32 -> vector<8x256xf32>
    %c5 = arith.constant 5 : index
    %c0_24 = arith.constant 0 : index
    %c0_25 = arith.constant 0 : index
    %39 = vector.load %arg2[%c5, %c0_24, %c0_25] : memref<28x8x256xf32, #tpu.memory_space<vmem>>, vector<1x8x256xf32>
    %40 = vector.shape_cast %39 : vector<1x8x256xf32> to vector<8x256xf32>
    %41 = arith.mulf %38, %40 : vector<8x256xf32>
    %42 = arith.addf %37, %41 : vector<8x256xf32>
    %c16_i32 = arith.constant 16 : i32
    %43 = tpu.dynamic_rotate %35 by %c16_i32 dim 1 : vector<8x256xf32>, i32 -> vector<8x256xf32>
    %c6 = arith.constant 6 : index
    %c0_26 = arith.constant 0 : index
    %c0_27 = arith.constant 0 : index
    %44 = vector.load %arg2[%c6, %c0_26, %c0_27] : memref<28x8x256xf32, #tpu.memory_space<vmem>>, vector<1x8x256xf32>
    %45 = vector.shape_cast %44 : vector<1x8x256xf32> to vector<8x256xf32>
    %46 = arith.mulf %43, %45 : vector<8x256xf32>
    %47 = arith.addf %42, %46 : vector<8x256xf32>
    %c15_i32 = arith.constant 15 : i32
    %48 = tpu.dynamic_rotate %35 by %c15_i32 dim 1 : vector<8x256xf32>, i32 -> vector<8x256xf32>
    %c7 = arith.constant 7 : index
    %c0_28 = arith.constant 0 : index
    %c0_29 = arith.constant 0 : index
    %49 = vector.load %arg2[%c7, %c0_28, %c0_29] : memref<28x8x256xf32, #tpu.memory_space<vmem>>, vector<1x8x256xf32>
    %50 = vector.shape_cast %49 : vector<1x8x256xf32> to vector<8x256xf32>
    %51 = arith.mulf %48, %50 : vector<8x256xf32>
    %52 = arith.addf %47, %51 : vector<8x256xf32>
    %c1_i32 = arith.constant 1 : i32
    %53 = tpu.dynamic_rotate %35 by %c1_i32 dim 1 : vector<8x256xf32>, i32 -> vector<8x256xf32>
    %c8 = arith.constant 8 : index
    %c0_30 = arith.constant 0 : index
    %c0_31 = arith.constant 0 : index
    %54 = vector.load %arg2[%c8, %c0_30, %c0_31] : memref<28x8x256xf32, #tpu.memory_space<vmem>>, vector<1x8x256xf32>
    %55 = vector.shape_cast %54 : vector<1x8x256xf32> to vector<8x256xf32>
    %56 = arith.mulf %53, %55 : vector<8x256xf32>
    %57 = arith.addf %52, %56 : vector<8x256xf32>
    %c9 = arith.constant 9 : index
    %c0_32 = arith.constant 0 : index
    %c0_33 = arith.constant 0 : index
    %58 = vector.load %arg2[%c9, %c0_32, %c0_33] : memref<28x8x256xf32, #tpu.memory_space<vmem>>, vector<1x8x256xf32>
    %59 = vector.shape_cast %58 : vector<1x8x256xf32> to vector<8x256xf32>
    %60 = arith.mulf %35, %59 : vector<8x256xf32>
    %61 = arith.addf %57, %60 : vector<8x256xf32>
    %c255_i32 = arith.constant 255 : i32
    %62 = tpu.dynamic_rotate %35 by %c255_i32 dim 1 : vector<8x256xf32>, i32 -> vector<8x256xf32>
    %c10 = arith.constant 10 : index
    %c0_34 = arith.constant 0 : index
    %c0_35 = arith.constant 0 : index
    %63 = vector.load %arg2[%c10, %c0_34, %c0_35] : memref<28x8x256xf32, #tpu.memory_space<vmem>>, vector<1x8x256xf32>
    %64 = vector.shape_cast %63 : vector<1x8x256xf32> to vector<8x256xf32>
    %65 = arith.mulf %62, %64 : vector<8x256xf32>
    %66 = arith.addf %61, %65 : vector<8x256xf32>
    %c241_i32 = arith.constant 241 : i32
    %67 = tpu.dynamic_rotate %35 by %c241_i32 dim 1 : vector<8x256xf32>, i32 -> vector<8x256xf32>
    %c11 = arith.constant 11 : index
    %c0_36 = arith.constant 0 : index
    %c0_37 = arith.constant 0 : index
    %68 = vector.load %arg2[%c11, %c0_36, %c0_37] : memref<28x8x256xf32, #tpu.memory_space<vmem>>, vector<1x8x256xf32>
    %69 = vector.shape_cast %68 : vector<1x8x256xf32> to vector<8x256xf32>
    %70 = arith.mulf %67, %69 : vector<8x256xf32>
    %71 = arith.addf %66, %70 : vector<8x256xf32>
    %c240_i32 = arith.constant 240 : i32
    %72 = tpu.dynamic_rotate %35 by %c240_i32 dim 1 : vector<8x256xf32>, i32 -> vector<8x256xf32>
    %c12 = arith.constant 12 : index
    %c0_38 = arith.constant 0 : index
    %c0_39 = arith.constant 0 : index
    %73 = vector.load %arg2[%c12, %c0_38, %c0_39] : memref<28x8x256xf32, #tpu.memory_space<vmem>>, vector<1x8x256xf32>
    %74 = vector.shape_cast %73 : vector<1x8x256xf32> to vector<8x256xf32>
    %75 = arith.mulf %72, %74 : vector<8x256xf32>
    %76 = arith.addf %71, %75 : vector<8x256xf32>
    %c239_i32 = arith.constant 239 : i32
    %77 = tpu.dynamic_rotate %35 by %c239_i32 dim 1 : vector<8x256xf32>, i32 -> vector<8x256xf32>
    %c13 = arith.constant 13 : index
    %c0_40 = arith.constant 0 : index
    %c0_41 = arith.constant 0 : index
    %78 = vector.load %arg2[%c13, %c0_40, %c0_41] : memref<28x8x256xf32, #tpu.memory_space<vmem>>, vector<1x8x256xf32>
    %79 = vector.shape_cast %78 : vector<1x8x256xf32> to vector<8x256xf32>
    %80 = arith.mulf %77, %79 : vector<8x256xf32>
    %81 = arith.addf %76, %80 : vector<8x256xf32>
    %cst_42 = arith.constant 0.000000e+00 : f32
    %82 = vector.broadcast %cst_42 : f32 to vector<8x256xf32>
    %83 = arith.maximumf %81, %82 : vector<8x256xf32>
    %cst_43 = arith.constant dense<0.000000e+00> : vector<8xf32>
    %84 = vector.multi_reduction <add>, %83, %cst_43 [1] : vector<8x256xf32> to vector<8xf32>
    %85 = vector.shape_cast %84 : vector<8xf32> to vector<8x1xf32>
    %cst_44 = arith.constant 3.906250e-03 : f32
    %86 = vector.broadcast %cst_44 : f32 to vector<8x1xf32>
    %87 = arith.mulf %85, %86 : vector<8x1xf32>
    %88 = vector.broadcast %87 : vector<8x1xf32> to vector<8x8xf32>
    %89 = arith.mulf %88, %1 : vector<8x8xf32>
    %cst_45 = arith.constant dense<0.000000e+00> : vector<8xf32>
    %90 = vector.multi_reduction <add>, %89, %cst_45 [0] : vector<8x8xf32> to vector<8xf32>
    %91 = vector.shape_cast %90 : vector<8xf32> to vector<1x8xf32>
    %92 = vector.extract_strided_slice %3 {offsets = [0, 0], sizes = [1, 8], strides = [1, 1]} : vector<8x8xf32> to vector<1x8xf32>
    %93 = arith.addf %91, %92 : vector<1x8xf32>
    %cst_46 = arith.constant 0.000000e+00 : f32
    %94 = vector.broadcast %cst_46 : f32 to vector<1x8xf32>
    %95 = arith.maximumf %93, %94 : vector<1x8xf32>
    %96 = vector.broadcast %95 : vector<1x8xf32> to vector<8x8xf32>
    %97 = arith.mulf %5, %96 : vector<8x8xf32>
    %cst_47 = arith.constant dense<0.000000e+00> : vector<8xf32>
    %98 = vector.multi_reduction <add>, %97, %cst_47 [1] : vector<8x8xf32> to vector<8xf32>
    %99 = vector.shape_cast %98 : vector<8xf32> to vector<8x1xf32>
    %cst_48 = arith.constant 0.166666672 : f32
    %100 = vector.broadcast %cst_48 : f32 to vector<8x1xf32>
    %101 = arith.mulf %99, %100 : vector<8x1xf32>
    %cst_49 = arith.constant 5.000000e-01 : f32
    %102 = vector.broadcast %cst_49 : f32 to vector<8x1xf32>
    %103 = arith.addf %101, %102 : vector<8x1xf32>
    %cst_50 = arith.constant 0.000000e+00 : f32
    %cst_51 = arith.constant 1.000000e+00 : f32
    %104 = vector.broadcast %cst_50 : f32 to vector<8x1xf32>
    %105 = arith.maximumf %104, %103 : vector<8x1xf32>
    %106 = vector.broadcast %cst_51 : f32 to vector<8x1xf32>
    %107 = arith.minimumf %106, %105 : vector<8x1xf32>
    %108 = vector.broadcast %107 : vector<8x1xf32> to vector<8x256xf32>
    %109 = arith.mulf %83, %108 : vector<8x256xf32>
    %c27 = arith.constant 27 : index
    %c0_52 = arith.constant 0 : index
    %c0_53 = arith.constant 0 : index
    %110 = vector.load %arg2[%c27, %c0_52, %c0_53] : memref<28x8x256xf32, #tpu.memory_space<vmem>>, vector<1x8x256xf32>
    %111 = vector.shape_cast %110 : vector<1x8x256xf32> to vector<8x256xf32>
    %c15 = arith.constant 15 : index
    %c0_54 = arith.constant 0 : index
    %c0_55 = arith.constant 0 : index
    %112 = vector.load %arg2[%c15, %c0_54, %c0_55] : memref<28x8x256xf32, #tpu.memory_space<vmem>>, vector<1x8x256xf32>
    %113 = vector.shape_cast %112 : vector<1x8x256xf32> to vector<8x256xf32>
    %114 = vector.extract_strided_slice %109 {offsets = [0, 0], sizes = [1, 256], strides = [1, 1]} : vector<8x256xf32> to vector<1x256xf32>
    %115 = vector.broadcast %114 : vector<1x256xf32> to vector<8x256xf32>
    %116 = arith.mulf %113, %115 : vector<8x256xf32>
    %117 = arith.addf %111, %116 : vector<8x256xf32>
    %c16 = arith.constant 16 : index
    %c0_56 = arith.constant 0 : index
    %c0_57 = arith.constant 0 : index
    %118 = vector.load %arg2[%c16, %c0_56, %c0_57] : memref<28x8x256xf32, #tpu.memory_space<vmem>>, vector<1x8x256xf32>
    %119 = vector.shape_cast %118 : vector<1x8x256xf32> to vector<8x256xf32>
    %120 = vector.extract_strided_slice %109 {offsets = [1, 0], sizes = [1, 256], strides = [1, 1]} : vector<8x256xf32> to vector<1x256xf32>
    %121 = vector.broadcast %120 : vector<1x256xf32> to vector<8x256xf32>
    %122 = arith.mulf %119, %121 : vector<8x256xf32>
    %123 = arith.addf %117, %122 : vector<8x256xf32>
    %c17 = arith.constant 17 : index
    %c0_58 = arith.constant 0 : index
    %c0_59 = arith.constant 0 : index
    %124 = vector.load %arg2[%c17, %c0_58, %c0_59] : memref<28x8x256xf32, #tpu.memory_space<vmem>>, vector<1x8x256xf32>
    %125 = vector.shape_cast %124 : vector<1x8x256xf32> to vector<8x256xf32>
    %126 = vector.extract_strided_slice %109 {offsets = [2, 0], sizes = [1, 256], strides = [1, 1]} : vector<8x256xf32> to vector<1x256xf32>
    %127 = vector.broadcast %126 : vector<1x256xf32> to vector<8x256xf32>
    %128 = arith.mulf %125, %127 : vector<8x256xf32>
    %129 = arith.addf %123, %128 : vector<8x256xf32>
    %c18 = arith.constant 18 : index
    %c0_60 = arith.constant 0 : index
    %c0_61 = arith.constant 0 : index
    %130 = vector.load %arg2[%c18, %c0_60, %c0_61] : memref<28x8x256xf32, #tpu.memory_space<vmem>>, vector<1x8x256xf32>
    %131 = vector.shape_cast %130 : vector<1x8x256xf32> to vector<8x256xf32>
    %132 = vector.extract_strided_slice %109 {offsets = [3, 0], sizes = [1, 256], strides = [1, 1]} : vector<8x256xf32> to vector<1x256xf32>
    %133 = vector.broadcast %132 : vector<1x256xf32> to vector<8x256xf32>
    %134 = arith.mulf %131, %133 : vector<8x256xf32>
    %135 = arith.addf %129, %134 : vector<8x256xf32>
    %c19 = arith.constant 19 : index
    %c0_62 = arith.constant 0 : index
    %c0_63 = arith.constant 0 : index
    %136 = vector.load %arg2[%c19, %c0_62, %c0_63] : memref<28x8x256xf32, #tpu.memory_space<vmem>>, vector<1x8x256xf32>
    %137 = vector.shape_cast %136 : vector<1x8x256xf32> to vector<8x256xf32>
    %138 = vector.extract_strided_slice %109 {offsets = [4, 0], sizes = [1, 256], strides = [1, 1]} : vector<8x256xf32> to vector<1x256xf32>
    %139 = vector.broadcast %138 : vector<1x256xf32> to vector<8x256xf32>
    %140 = arith.mulf %137, %139 : vector<8x256xf32>
    %141 = arith.addf %135, %140 : vector<8x256xf32>
    %c20 = arith.constant 20 : index
    %c0_64 = arith.constant 0 : index
    %c0_65 = arith.constant 0 : index
    %142 = vector.load %arg2[%c20, %c0_64, %c0_65] : memref<28x8x256xf32, #tpu.memory_space<vmem>>, vector<1x8x256xf32>
    %143 = vector.shape_cast %142 : vector<1x8x256xf32> to vector<8x256xf32>
    %144 = vector.extract_strided_slice %109 {offsets = [5, 0], sizes = [1, 256], strides = [1, 1]} : vector<8x256xf32> to vector<1x256xf32>
    %145 = vector.broadcast %144 : vector<1x256xf32> to vector<8x256xf32>
    %146 = arith.mulf %143, %145 : vector<8x256xf32>
    %147 = arith.addf %141, %146 : vector<8x256xf32>
    %c21 = arith.constant 21 : index
    %c0_66 = arith.constant 0 : index
    %c0_67 = arith.constant 0 : index
    %148 = vector.load %arg2[%c21, %c0_66, %c0_67] : memref<28x8x256xf32, #tpu.memory_space<vmem>>, vector<1x8x256xf32>
    %149 = vector.shape_cast %148 : vector<1x8x256xf32> to vector<8x256xf32>
    %150 = vector.extract_strided_slice %109 {offsets = [6, 0], sizes = [1, 256], strides = [1, 1]} : vector<8x256xf32> to vector<1x256xf32>
    %151 = vector.broadcast %150 : vector<1x256xf32> to vector<8x256xf32>
    %152 = arith.mulf %149, %151 : vector<8x256xf32>
    %153 = arith.addf %147, %152 : vector<8x256xf32>
    %c22 = arith.constant 22 : index
    %c0_68 = arith.constant 0 : index
    %c0_69 = arith.constant 0 : index
    %154 = vector.load %arg2[%c22, %c0_68, %c0_69] : memref<28x8x256xf32, #tpu.memory_space<vmem>>, vector<1x8x256xf32>
    %155 = vector.shape_cast %154 : vector<1x8x256xf32> to vector<8x256xf32>
    %156 = vector.extract_strided_slice %109 {offsets = [7, 0], sizes = [1, 256], strides = [1, 1]} : vector<8x256xf32> to vector<1x256xf32>
    %157 = vector.broadcast %156 : vector<1x256xf32> to vector<8x256xf32>
    %158 = arith.mulf %155, %157 : vector<8x256xf32>
    %159 = arith.addf %153, %158 : vector<8x256xf32>
    %c23 = arith.constant 23 : index
    %c0_70 = arith.constant 0 : index
    %c0_71 = arith.constant 0 : index
    %160 = vector.load %arg2[%c23, %c0_70, %c0_71] : memref<28x8x256xf32, #tpu.memory_space<vmem>>, vector<1x8x256xf32>
    %161 = vector.shape_cast %160 : vector<1x8x256xf32> to vector<8x256xf32>
    %162 = vector.extract_strided_slice %7 {offsets = [0, 0], sizes = [1, 256], strides = [1, 1]} : vector<4x256xf32> to vector<1x256xf32>
    %163 = vector.broadcast %162 : vector<1x256xf32> to vector<8x256xf32>
    %164 = arith.mulf %161, %163 : vector<8x256xf32>
    %165 = arith.addf %159, %164 : vector<8x256xf32>
    %c24 = arith.constant 24 : index
    %c0_72 = arith.constant 0 : index
    %c0_73 = arith.constant 0 : index
    %166 = vector.load %arg2[%c24, %c0_72, %c0_73] : memref<28x8x256xf32, #tpu.memory_space<vmem>>, vector<1x8x256xf32>
    %167 = vector.shape_cast %166 : vector<1x8x256xf32> to vector<8x256xf32>
    %168 = vector.extract_strided_slice %7 {offsets = [1, 0], sizes = [1, 256], strides = [1, 1]} : vector<4x256xf32> to vector<1x256xf32>
    %169 = vector.broadcast %168 : vector<1x256xf32> to vector<8x256xf32>
    %170 = arith.mulf %167, %169 : vector<8x256xf32>
    %171 = arith.addf %165, %170 : vector<8x256xf32>
    %c25 = arith.constant 25 : index
    %c0_74 = arith.constant 0 : index
    %c0_75 = arith.constant 0 : index
    %172 = vector.load %arg2[%c25, %c0_74, %c0_75] : memref<28x8x256xf32, #tpu.memory_space<vmem>>, vector<1x8x256xf32>
    %173 = vector.shape_cast %172 : vector<1x8x256xf32> to vector<8x256xf32>
    %174 = vector.extract_strided_slice %7 {offsets = [2, 0], sizes = [1, 256], strides = [1, 1]} : vector<4x256xf32> to vector<1x256xf32>
    %175 = vector.broadcast %174 : vector<1x256xf32> to vector<8x256xf32>
    %176 = arith.mulf %173, %175 : vector<8x256xf32>
    %177 = arith.addf %171, %176 : vector<8x256xf32>
    %c26 = arith.constant 26 : index
    %c0_76 = arith.constant 0 : index
    %c0_77 = arith.constant 0 : index
    %178 = vector.load %arg2[%c26, %c0_76, %c0_77] : memref<28x8x256xf32, #tpu.memory_space<vmem>>, vector<1x8x256xf32>
    %179 = vector.shape_cast %178 : vector<1x8x256xf32> to vector<8x256xf32>
    %180 = vector.extract_strided_slice %7 {offsets = [3, 0], sizes = [1, 256], strides = [1, 1]} : vector<4x256xf32> to vector<1x256xf32>
    %181 = vector.broadcast %180 : vector<1x256xf32> to vector<8x256xf32>
    %182 = arith.mulf %179, %181 : vector<8x256xf32>
    %183 = arith.addf %177, %182 : vector<8x256xf32>
    %cst_78 = arith.constant 0.000000e+00 : f32
    %184 = vector.broadcast %cst_78 : f32 to vector<8x256xf32>
    %185 = arith.maximumf %183, %184 : vector<8x256xf32>
    %c0_79 = arith.constant 0 : index
    %c0_80 = arith.constant 0 : index
    %c0_81 = arith.constant 0 : index
    %186 = vector.load %arg4[%c0_79, %c0_80, %c0_81] : memref<1x8x256xf32, #tpu.memory_space<vmem>>, vector<1x8x256xf32>
    %187 = vector.shape_cast %186 : vector<1x8x256xf32> to vector<8x256xf32>
    %188 = vector.shape_cast %185 : vector<8x256xf32> to vector<1x8x256xf32>
    tpu.vector_store %arg4[%c0_79, %c0_80, %c0_81], %188 {strides = array<i32>} : memref<1x8x256xf32, #tpu.memory_space<vmem>>, vector<1x8x256xf32>,
    return
  }
  func.func @transform_0(%arg0: i32) -> (i32, i32, i32) {
    %c0_i32 = arith.constant 0 : i32
    %c0_i32_0 = arith.constant 0 : i32
    %c0_i32_1 = arith.constant 0 : i32
    return %arg0, %c0_i32, %c0_i32_0 : i32, i32, i32
  }
  func.func @transform_1(%arg0: i32) -> (i32, i32, i32) {
    %c0_i32 = arith.constant 0 : i32
    %c0_i32_0 = arith.constant 0 : i32
    %c0_i32_1 = arith.constant 0 : i32
    %c0_i32_2 = arith.constant 0 : i32
    return %c0_i32, %c0_i32_0, %c0_i32_1 : i32, i32, i32
  }
  func.func @transform_2(%arg0: i32) -> (i32, i32, i32) {
    %c0_i32 = arith.constant 0 : i32
    %c0_i32_0 = arith.constant 0 : i32
    %c0_i32_1 = arith.constant 0 : i32
    %c0_i32_2 = arith.constant 0 : i32
    return %c0_i32, %c0_i32_0, %c0_i32_1 : i32, i32, i32
  }
  func.func @transform_3(%arg0: i32) -> (i32, i32, i32) {
    %c0_i32 = arith.constant 0 : i32
    %c0_i32_0 = arith.constant 0 : i32
    %c0_i32_1 = arith.constant 0 : i32
    return %arg0, %c0_i32, %c0_i32_0 : i32, i32, i32
  }
}

</mosaic_0001>

<bundles_post_ra>
// kernel: block_forward.1
= control target key start
LH: loop header
LB: loop body
LE: loop exit
PB: predicated region body
PF: predicated region fallthrough
CT: control target
= control target key end

     0   :  { %8 = vsyncpa [#allocation3], 0  ;;  %s791_s12 = smov 0   ;;  %s984_s0 = inlined_call_operand.vmem [shape: f32[2,4,256], index: 0, kind: input, shape index: {}]   ;;  %s985_s1 = inlined_call_operand.hbm [shape: f32[28,8,256], index: 1, kind: input, shape index: {}]   ;;  %s986_s2 = inlined_call_operand.vmem [shape: f32[3,8,8], index: 2, kind: input, shape index: {}]   ;;  %s987_s3 = inlined_call_operand.vmem [shape: f32[2,8,256], index: 3, kind: output, shape index: {}]  }
   0x1 LB: > { %s797_s13 = sadd.s32 4294967295, %s758_s12   ;;  %p676_p0 = scmp.ge.s32.totalorder %s758_s12, 1  ;;  %s758_s12 = sphi %s791_s12, %s14_s12  }
   0x2   : > { %p113_p1 = scmp.lt.s32.totalorder %s758_s12, 3  ;;  %s760_s14 = smov [#allocation2]  }
   0x3   : > { %s125_s15 = sshll.u32 %s760_s14, 4  ;;  %p988_p3 = scmp.eq.s32.totalorder %s797_s13, 0  ;;  %s126_s15 = int_to_ptr.vmem [resolvable:$true] %s125_s15 }
   0x4   : > { %p801_p2 = pnand %p676_p0, %p113_p1  ;;  %s720_s20 = scalar_lea.hbm %s985_s1, 7168 }
   0x5   : > { %p721_p6 = scmp.ne.s32.totalorder %s985_s1, %s720_s20  ;;  %p727_p10 = scmp.lt.u32.totalorder %s720_s20, %s985_s1 }
   0x6   : > { %s990_s16 = scalar_select %p801_p2, 1, 0 }
   0x7   : > { %p695_p4 = pneg %p801_p2 }
   0x9   : > { %p810_p5 = pnand %p988_p3, %p695_p4 }
   0xb   : > { %p722_p7 = pneg %p810_p5 }
   0xd   : > { %p723_p8 = pnand %p722_p7, %p721_p6 }
   0xf   : > { %p724_p9 = pneg %p723_p8 }
  0x11   : > { %p729_p11 = pnand %p727_p10, %p724_p9 }
  0x13   : > { %732 = shalt.err (!%p729_p11)
}
  0x14   : > { %s733_s25 = scalar_lea.vmem %s126_s15, 7168  ;;  %p741_p1 = scmp.lt.s32.totalorder %s126_s15, %s126_s15 }
  0x15   : > { %p734_p12 = scmp.ne.s32.totalorder %s126_s15, %s733_s25  ;;  %p742_p4 = scmp.lt.s32.totalorder %s733_s25, %s733_s25 }
  0x17   : > { %p736_p13 = pnand %p734_p12, %p722_p7  ;;  %p743_p3 = por %p742_p4, %p741_p1 }
  0x19   : > { %p737_p0 = pneg %p736_p13 }
  0x1b   : > { %p744_p2 = pnand %p743_p3, %p737_p0 }
  0x1d   : > { %747 = shalt.err (!%p744_p2)
}
  0x1e   : > { %s761_s26 = smov 256   ;;  %s762_s27 = smov 16  }
  0x1f   : > { %698 = dma.hbm_to_vmem [thread:$0]  (!%p810_p5), %s985_s1, 7168, %s126_s15, [#allocation3], %s761_s26, %s761_s26, %s762_s27  }
  0x20   : > { %p992_p6 = scmp.ne.s32.totalorder %s990_s16, 0 }
  0x21   : > { %p993_p8 = scmp.eq.s32.totalorder (!%p992_p6), %s797_s13, 0 }
  0x22   : > { %152 = sbr.rel (%p992_p6) target bundleno = 567 (0x237), region = 32 }
  0x29   : > { %753 = dma.done.wait (%p993_p8), [#allocation3], 7168   ;;  %p994_p7 = pmov %p993_p8 }
  0x2a   : > { %p176_p2 = scmp.lt.s32.totalorder %s797_s13, 1  ;;  %v198_v0 = vlaneseq  ;;  %v195_v15 = vld [vmem:[#allocation2] sm:$0xff]  ;;  %v221_v16 = vld [vmem:[#allocation2 + $0x10] sm:$0xff]  ;;  %v196_v24 = vld [vmem:[#allocation2 + $0x8] sm:$0xff]  ;;  %s763_s7 = smov 16   ;;  %vm428_vm8 = vcmask 64512  }
  0x2b   : > { %755 = vsyncadd (%p994_p7), [#allocation3], 4294960128  ;;  %v222_v25 = vld [vmem:[#allocation2 + $0x18] sm:$0xff]  ;;  %v193_v26 = vld [vmem:[#allocation2 + $0x40] sm:$0xff]  ;;  %s764_s8 = smov 17   ;;  %s765_s9 = smov 15  }
  0x2c   : > { %s996_s13 = smov (!%p176_p2, %s797_s13), 1  ;;  %v199_v1 = vshrl.u32 %v198_v0, 7  ;;  %v246_v27 = vld [vmem:[#allocation2 + $0x20] sm:$0xff]  ;;  %v194_v34 = vld [vmem:[#allocation2 + $0x48] sm:$0xff]  ;;  %v271_v36 = vld [vmem:[#allocation2 + $0x30] sm:$0xff]  ;;  %s766_s10 = smov 1  }
  0x2d   : > { %s689_s30 = sshll.u32 %s996_s13, 3  ;;  %v247_v35 = vld [vmem:[#allocation2 + $0x28] sm:$0xff]  ;;  %v272_v42 = vld [vmem:[#allocation2 + $0x38] sm:$0xff]  ;;  %s767_s11 = smov 127   ;;  %v912_v55 = vand.u32 127, %v198_v0  ;;  %v310_v58 = vld [vmem:[#allocation2 + $0x50] sm:$0xff] }
  0x2e   : > { %v842_v2 = vsub.s32 0, %v199_v1  ;;  %v844_v3 = vsub.s32 1, %v199_v1  ;;  %v846_v4 = vsub.s32 2, %v199_v1  ;;  %v848_v5 = vsub.s32 3, %v199_v1  ;;  %s180_s6 = scalar_lea.vmem %s984_s0, %s689_s30  ;;  %s768_s14 = smov 113   ;;  %v311_v59 = vld [vmem:[#allocation2 + $0x58] sm:$0xff] }
  0x2f   : > { %v853_v6 = vsub.s32 4, %v199_v1  ;;  %v855_v7 = vsub.s32 5, %v199_v1  ;;  %v857_v8 = vsub.s32 6, %v199_v1  ;;  %v859_v9 = vsub.s32 7, %v199_v1  ;;  %v191_v10 = vld [vmem:[%s180_s6] sm:$0xff]  ;;  %s769_s15 = smov 112  }
  0x30   : > { %v201_v11 = vrot.slane %v191_v10, %v842_v2  ;;  %v226_v12 = vrot.slane %v191_v10, %v844_v3  ;;  %v251_v13 = vrot.slane %v191_v10, %v846_v4  ;;  %v276_v14 = vrot.slane %v191_v10, %v848_v5  ;;  %s770_s16 = smov 111   ;;  %v324_v60 = vld [vmem:[#allocation2 + $0x60] sm:$0xff]  ;;  %v325_v63 = vld [vmem:[#allocation2 + $0x68] sm:$0xff]  ;;  %s690_s23 = sshll.u32 %s996_s13, 4 }
  0x31   : > { %v205_v17 = vrot.slane %v191_v10, %v853_v6  ;;  %v230_v18 = vrot.slane %v191_v10, %v855_v7  ;;  %v255_v19 = vrot.slane %v191_v10, %v857_v8  ;;  %v280_v20 = vrot.slane %v191_v10, %v859_v9  ;;  %s185_s26 = scalar_lea.vmem %s987_s3, %s690_s23 }
  0x32   : > { %v870_v21 = vrot.slane %v201_v11, %v842_v2  ;;  %v873_v22 = vrot.slane %v226_v12, %v844_v3  ;;  %v876_v23 = vrot.slane %v251_v13, %v846_v4  ;;  %v890_v33 = vrot.slane %v276_v14, %v848_v5  ;;  %v298_v11 = vld [vmem:[#allocation2 + $0xe0] sm:$0xff]  ;;  %v299_v12 = vld [vmem:[#allocation2 + $0xe8] sm:$0xff] }
  0x33   : > { %v879_v28 = vrot.slane %v205_v17, %v842_v2  ;;  %v882_v29 = vrot.slane %v230_v18, %v844_v3  ;;  %v885_v30 = vrot.slane %v255_v19, %v846_v4  ;;  %v895_v39 = vrot.slane %v280_v20, %v848_v5  ;;  %v339_v17 = vld [vmem:[#allocation2 + $0x78] sm:$0xff] }
  0x34   : > { %v216_v31 = vmul.f32 %v870_v21, %v195_v15  ;;  %v241_v32 = vmul.f32 %v873_v22, %v221_v16  ;;  %v266_v41 = vmul.f32 %v876_v23, %v246_v27  ;;  %v291_v46 = vmul.f32 %v890_v33, %v271_v36  ;;  %v338_v16 = vld [vmem:[#allocation2 + $0x70] sm:$0xff] }
  0x35   : > { %v217_v37 = vmul.f32 %v879_v28, %v196_v24  ;;  %v242_v38 = vmul.f32 %v882_v29, %v222_v25  ;;  %v267_v44 = vmul.f32 %v885_v30, %v247_v35  ;;  %v292_v48 = vmul.f32 %v895_v39, %v272_v42 }
  0x36   : > { %v218_v40 = vadd.f32 %v216_v31, %v193_v26  ;;  %vm320_vm0 = vcmp.lt.s32.totalorder %v912_v55, 16  ;;  %vm306_vm1 = vcmp.lt.s32.totalorder %v912_v55, 17  ;;  %vm334_vm2 = vcmp.lt.s32.totalorder %v912_v55, 15 }
  0x37   : > { %v219_v43 = vadd.f32 %v217_v37, %v194_v34  ;;  %vm348_vm3 = vcmp.lt.s32.totalorder %v912_v55, 1  ;;  %vm369_vm4 = vcmp.lt.s32.totalorder %v912_v55, 127  ;;  %vm383_vm5 = vcmp.lt.s32.totalorder %v912_v55, 113 }
  0x38   : > { %v243_v45 = vadd.f32 %v241_v32, %v218_v40  ;;  %v360_v32 = vld [vmem:[#allocation2 + $0x98] sm:$0xff]  ;;  %v352_v40 = vld [vmem:[#allocation2 + $0x80] sm:$0xff]  ;;  %vm397_vm6 = vcmp.lt.s32.totalorder %v912_v55, 112  ;;  %vm411_vm7 = vcmp.lt.s32.totalorder %v912_v55, 111 }
  0x39   : > { %v244_v47 = vadd.f32 %v242_v38, %v219_v43  ;;  %v359_v38 = vld [vmem:[#allocation2 + $0x90] sm:$0xff]  ;;  %v186_v55 = vld [vmem:[%s986_s2] sm:$0xff] }
  0x3a   : > { %v268_v49 = vadd.f32 %v266_v41, %v243_v45  ;;  %v353_v41 = vld [vmem:[#allocation2 + $0x88] sm:$0xff] }
  0x3b   : > { %v269_v50 = vadd.f32 %v267_v44, %v244_v47 }
  0x3c   : > { %v293_v51 = vadd.f32 %v291_v46, %v268_v49 }
  0x3d   : > { %v294_v52 = vadd.f32 %v292_v48, %v269_v50 }
  0x3e   : > { %v901_v53 = vmax.f32 %v293_v51, 0.0 }
  0x3f   : > { %v296_v54 = vmax.f32 %v294_v52, 0.0  ;;  %v373_v52 = vld [vmem:[#allocation2 + $0xa0] sm:$0xff] }
  0x40   : > { %316 = vrot.lane.b32.xlu1 %v901_v53, %s763_s7  ;;  %300 = vrot.lane.b32.xlu0 %v901_v53, %s764_s8  ;;  %v361_v47 = vmul.f32 %v359_v38, %v901_v53 }
  0x41   : > { %v362_v44 = vmul.f32 %v360_v32, %v296_v54 }
  0x44   : > { %318 = vrot.lane.b32.xlu1 %v296_v54, %s763_s7  ;;  %302 = vrot.lane.b32.xlu0 %v296_v54, %s764_s8 }
  0x48   : > { %332 = vrot.lane.b32.xlu1 %v296_v54, %s765_s9  ;;  %330 = vrot.lane.b32.xlu0 %v901_v53, %s765_s9 }
  0x4c   : > { %346 = vrot.lane.b32.xlu1 %v296_v54, %s766_s10  ;;  %344 = vrot.lane.b32.xlu0 %v901_v53, %s766_s10 }
  0x50   : > { %367 = vrot.lane.b32.xlu1 %v296_v54, %s767_s11  ;;  %365 = vrot.lane.b32.xlu0 %v901_v53, %s767_s11 }
  0x54   : > { %381 = vrot.lane.b32.xlu1 %v296_v54, %s768_s14  ;;  %379 = vrot.lane.b32.xlu0 %v901_v53, %s768_s14 }
  0x58   : > { %395 = vrot.lane.b32.xlu1 %v296_v54, %s769_s15  ;;  %393 = vrot.lane.b32.xlu0 %v901_v53, %s769_s15 }
  0x5c   : > { %409 = vrot.lane.b32.xlu1 %v296_v54, %s770_s16  ;;  %407 = vrot.lane.b32.xlu0 %v901_v53, %s770_s16  ;;  %v388_v53 = vld [vmem:[#allocation2 + $0xb8] sm:$0xff] }
  0xb2   : > { %v317_v56 = vpop.permute.xlu1 %316  ;;  %v301_v57 = vpop.permute.xlu0 %300 }
  0xb6   : > { %v319_v61 = vpop.permute.xlu1 %318  ;;  %v303_v62 = vpop.permute.xlu0 %302 }
  0xb7   : > { %v321_v1 = vsel %vm320_vm0, %v317_v56, %v319_v61  ;;  %v322_v10 = vsel %vm320_vm0, %v319_v61, %v317_v56  ;;  %v307_v13 = vsel %vm306_vm1, %v301_v57, %v303_v62  ;;  %v308_v14 = vsel %vm306_vm1, %v303_v62, %v301_v57  ;;  %v374_v56 = vld [vmem:[#allocation2 + $0xa8] sm:$0xff] }
  0xb8   : > { %v312_v0 = vmul.f32 %v310_v58, %v308_v14  ;;  %v313_v15 = vmul.f32 %v311_v59, %v307_v13  ;;  %v326_v18 = vmul.f32 %v324_v60, %v322_v10  ;;  %v327_v19 = vmul.f32 %v325_v63, %v321_v1 }
  0xba   : > { %v314_v20 = vadd.f32 %v312_v0, %v298_v11  ;;  %v315_v24 = vadd.f32 %v313_v15, %v299_v12  ;;  %v333_v25 = vpop.permute.xlu1 %332  ;;  %v331_v26 = vpop.permute.xlu0 %330  ;;  %v387_v11 = vld [vmem:[#allocation2 + $0xb0] sm:$0xff] }
  0xbb   : > { %v335_v27 = vsel %vm334_vm2, %v331_v26, %v333_v25  ;;  %v336_v31 = vsel %vm334_vm2, %v333_v25, %v331_v26 }
  0xbc   : > { %v328_v34 = vadd.f32 %v326_v18, %v314_v20  ;;  %v329_v35 = vadd.f32 %v327_v19, %v315_v24  ;;  %v340_v36 = vmul.f32 %v338_v16, %v336_v31  ;;  %v341_v37 = vmul.f32 %v339_v17, %v335_v27  ;;  %v401_v19 = vld [vmem:[#allocation2 + $0xc0] sm:$0xff]  ;;  %v402_v20 = vld [vmem:[#allocation2 + $0xc8] sm:$0xff] }
  0xbe   : > { %v347_v42 = vpop.permute.xlu1 %346  ;;  %v345_v43 = vpop.permute.xlu0 %344  ;;  %v342_v48 = vadd.f32 %v340_v36, %v328_v34  ;;  %v343_v49 = vadd.f32 %v341_v37, %v329_v35  ;;  %v415_v36 = vld [vmem:[#allocation2 + $0xd0] sm:$0xff]  ;;  %v416_v37 = vld [vmem:[#allocation2 + $0xd8] sm:$0xff] }
  0xbf   : > { %v349_v45 = vsel %vm348_vm3, %v345_v43, %v347_v42  ;;  %v350_v46 = vsel %vm348_vm3, %v347_v42, %v345_v43 }
  0xc0   : > { %v354_v50 = vmul.f32 %v352_v40, %v350_v46  ;;  %v355_v51 = vmul.f32 %v353_v41, %v349_v45 }
  0xc2   : > { %v356_v57 = vadd.f32 %v354_v50, %v342_v48  ;;  %v357_v58 = vadd.f32 %v355_v51, %v343_v49  ;;  %v368_v59 = vpop.permute.xlu1 %367  ;;  %v366_v60 = vpop.permute.xlu0 %365 }
  0xc3   : > { %v370_v61 = vsel %vm369_vm4, %v366_v60, %v368_v59  ;;  %v371_v62 = vsel %vm369_vm4, %v368_v59, %v366_v60 }
  0xc4   : > { %v364_v54 = vadd.f32 %v362_v44, %v357_v58  ;;  %v363_v63 = vadd.f32 %v361_v47, %v356_v57  ;;  %v375_v1 = vmul.f32 %v373_v52, %v370_v61  ;;  %v376_v10 = vmul.f32 %v374_v56, %v371_v62 }
  0xc6   : > { %v377_v12 = vadd.f32 %v375_v1, %v363_v63  ;;  %v378_v13 = vadd.f32 %v376_v10, %v364_v54  ;;  %v382_v14 = vpop.permute.xlu1 %381  ;;  %v380_v0 = vpop.permute.xlu0 %379  ;;  %v685_v63 = vld [vmem:[%s986_s2 + $0x8] sm:$0xff] }
  0xc7   : > { %v384_v15 = vsel %vm383_vm5, %v380_v0, %v382_v14  ;;  %v385_v16 = vsel %vm383_vm5, %v382_v14, %v380_v0 }
  0xc8   : > { %v389_v17 = vmul.f32 %v387_v11, %v384_v15  ;;  %v390_v18 = vmul.f32 %v388_v53, %v385_v16  ;;  %v686_v53 = vld [vmem:[%s986_s2 + $0x10] sm:$0xff] }
  0xca   : > { %v391_v24 = vadd.f32 %v389_v17, %v377_v12  ;;  %v392_v25 = vadd.f32 %v390_v18, %v378_v13  ;;  %v396_v26 = vpop.permute.xlu1 %395  ;;  %v394_v27 = vpop.permute.xlu0 %393 }
  0xcb   : > { %v398_v31 = vsel %vm397_vm6, %v394_v27, %v396_v26  ;;  %v399_v32 = vsel %vm397_vm6, %v396_v26, %v394_v27  ;;  %v453_v26 = vld [vmem:[#allocation2 + $0x1b0] sm:$0xff] }
  0xcc   : > { %v403_v34 = vmul.f32 %v401_v19, %v398_v31  ;;  %v404_v35 = vmul.f32 %v402_v20, %v399_v32 }
  0xce   : > { %v405_v38 = vadd.f32 %v403_v34, %v391_v24  ;;  %v406_v40 = vadd.f32 %v404_v35, %v392_v25  ;;  %v410_v41 = vpop.permute.xlu1 %409  ;;  %v408_v42 = vpop.permute.xlu0 %407  ;;  %v456_v24 = vld [vmem:[#allocation2 + $0xf0] sm:$0xff]  ;;  %v457_v25 = vld [vmem:[#allocation2 + $0xf8] sm:$0xff] }
  0xcf   : > { %v412_v43 = vsel %vm411_vm7, %v408_v42, %v410_v41  ;;  %v413_v44 = vsel %vm411_vm7, %v410_v41, %v408_v42  ;;  %v454_v35 = vld [vmem:[#allocation2 + $0x1b8] sm:$0xff]  ;;  %v486_v41 = vld [vmem:[#allocation2 + $0x110] sm:$0xff] }
  0xd0   : > { %v417_v45 = vmul.f32 %v415_v36, %v412_v43  ;;  %v418_v46 = vmul.f32 %v416_v37, %v413_v44  ;;  %v471_v36 = vld [vmem:[#allocation2 + $0x100] sm:$0xff]  ;;  %v472_v37 = vld [vmem:[#allocation2 + $0x108] sm:$0xff]  ;;  %v487_v42 = vld [vmem:[#allocation2 + $0x118] sm:$0xff] }
  0xd2   : > { %v419_v47 = vadd.f32 %v417_v45, %v405_v38  ;;  %v420_v48 = vadd.f32 %v418_v46, %v406_v40 }
  0xd4   : > { %v421_v49 = vmax.f32 %v419_v47, 0.0  ;;  %v422_v50 = vmax.f32 %v420_v48, 0.0 }
  0xd6   : > { %v423_v51 = vadd.f32 %v422_v50, %v421_v49 }
  0xd8   : > { %424 = vadd.xlane.f32.xlu0 %v423_v51 }
 0x165   : > { %v425_v52 = vpop.xlane.xlu0 %424 }
 0x166   : > { %v426_v56 = vmul.f32 0.00390625, %v425_v52 }
 0x168   : > { %v427_v57 = vmul.f32 %v426_v56, %v186_v55 }
 0x16a   : > { %v429_v58 = vsel %vm428_vm8, %v427_v57, 0.0 }
 0x16b   : > { %v430_v59 = vrot.slane %v429_v58, 4 }
 0x16d   : > { %v431_v60 = vadd.f32 %v430_v59, %v429_v58  ;;  %v516_v58 = vld [vmem:[#allocation2 + $0x130] sm:$0xff]  ;;  %v517_v59 = vld [vmem:[#allocation2 + $0x138] sm:$0xff] }
 0x16f   : > { %v432_v61 = vrot.slane %v431_v60, 2 }
 0x171   : > { %v433_v62 = vadd.f32 %v432_v61, %v431_v60  ;;  %v531_v61 = vld [vmem:[#allocation2 + $0x140] sm:$0xff] }
 0x173   : > { %v434_v54 = vrot.slane %v433_v62, 1 }
 0x175   : > { %v435_v1 = vadd.f32 %v434_v54, %v433_v62  ;;  %v532_v62 = vld [vmem:[#allocation2 + $0x148] sm:$0xff] }
 0x177   : > { %v436_v10 = vadd.f32 %v685_v63, %v435_v1 }
 0x179   : > { %v437_v11 = vmax.f32 %v436_v10, 0.0 }
 0x17b   : > { %v441_v12 = vrot.slane %v437_v11, %v842_v2 }
 0x17d   : > { %v442_v13 = vmul.f32 %v686_v53, %v441_v12 }
 0x17f   : > { %v443_v14 = vsel %vm428_vm8, %v442_v13, 0.0 }
 0x180   : > { %444 = vadd.xlane.f32.xlu1 %v443_v14 }
 0x20d   : > { %v445_v0 = vpop.xlane.xlu1 %444 }
 0x20e   : > { %v446_v15 = vmul.f32 0.16666667, %v445_v0  ;;  %v546_v0 = vld [vmem:[#allocation2 + $0x150] sm:$0xff] }
 0x210   : > { %v447_v16 = vadd.f32 0.5, %v446_v15  ;;  %v547_v15 = vld [vmem:[#allocation2 + $0x158] sm:$0xff] }
 0x212   : > { %v448_v17 = vmax.f32 %v447_v16, 0.0 }
 0x214   : > { %v449_v18 = vmin.f32 %v448_v17, 1.0  ;;  %v576_v17 = vld [vmem:[#allocation2 + $0x170] sm:$0xff] }
 0x216   : > { %v933_v19 = vmul.f32 %v449_v18, %v421_v49  ;;  %v935_v20 = vmul.f32 %v449_v18, %v422_v50  ;;  %v501_v49 = vld [vmem:[#allocation2 + $0x120] sm:$0xff]  ;;  %v502_v50 = vld [vmem:[#allocation2 + $0x128] sm:$0xff]  ;;  %v577_v18 = vld [vmem:[#allocation2 + $0x178] sm:$0xff] }
 0x218   : > { %v461_v27 = vrot.slane %v933_v19, %v842_v2  ;;  %v465_v31 = vrot.slane %v935_v20, %v842_v2  ;;  %v476_v32 = vrot.slane %v933_v19, %v844_v3  ;;  %v480_v34 = vrot.slane %v935_v20, %v844_v3 }
 0x219   : > { %v491_v38 = vrot.slane %v933_v19, %v846_v4  ;;  %v495_v40 = vrot.slane %v935_v20, %v846_v4  ;;  %v506_v2 = vrot.slane %v933_v19, %v848_v5  ;;  %v510_v45 = vrot.slane %v935_v20, %v848_v5 }
 0x21a   : > { %v466_v43 = vmul.f32 %v461_v27, %v456_v24  ;;  %v467_v44 = vmul.f32 %v465_v31, %v457_v25  ;;  %v481_v47 = vmul.f32 %v476_v32, %v471_v36  ;;  %v482_v48 = vmul.f32 %v480_v34, %v472_v37  ;;  %v561_v31 = vld [vmem:[#allocation2 + $0x160] sm:$0xff] }
 0x21b   : > { %v496_v51 = vmul.f32 %v491_v38, %v486_v41  ;;  %v497_v52 = vmul.f32 %v495_v40, %v487_v42  ;;  %v521_v56 = vrot.slane %v933_v19, %v853_v6  ;;  %v525_v57 = vrot.slane %v935_v20, %v853_v6  ;;  %v583_v40 = vld [vmem:[#allocation2 + $0x180] sm:$0xff]  ;;  %v584_v41 = vld [vmem:[#allocation2 + $0x188] sm:$0xff] }
 0x21c   : > { %v468_v3 = vadd.f32 %v466_v43, %v453_v26  ;;  %v469_v46 = vadd.f32 %v467_v44, %v454_v35  ;;  %v536_v5 = vrot.slane %v933_v19, %v855_v7  ;;  %v540_v60 = vrot.slane %v935_v20, %v855_v7 }
 0x21d   : > { %v511_v1 = vmul.f32 %v506_v2, %v501_v49  ;;  %v512_v10 = vmul.f32 %v510_v45, %v502_v50  ;;  %v551_v11 = vrot.slane %v933_v19, %v857_v8  ;;  %v555_v6 = vrot.slane %v935_v20, %v857_v8  ;;  %v562_v8 = vld [vmem:[#allocation2 + $0x168] sm:$0xff]  ;;  %v591_v45 = vld [vmem:[#allocation2 + $0x198] sm:$0xff] }
 0x21e   : > { %v483_v55 = vadd.f32 %v481_v47, %v468_v3  ;;  %v484_v4 = vadd.f32 %v482_v48, %v469_v46  ;;  %v526_v13 = vmul.f32 %v521_v56, %v516_v58  ;;  %v527_v14 = vmul.f32 %v525_v57, %v517_v59  ;;  %v597_v47 = vld [vmem:[#allocation2 + $0x1a0] sm:$0xff]  ;;  %v598_v48 = vld [vmem:[#allocation2 + $0x1a8] sm:$0xff] }
 0x21f   : > { %v541_v16 = vmul.f32 %v536_v5, %v531_v61  ;;  %v542_v7 = vmul.f32 %v540_v60, %v532_v62  ;;  %v566_v26 = vrot.slane %v933_v19, %v859_v9  ;;  %v570_v27 = vrot.slane %v935_v20, %v859_v9  ;;  %v590_v19 = vld [vmem:[#allocation2 + $0x190] sm:$0xff] }
 0x220   : > { %v498_v54 = vadd.f32 %v496_v51, %v483_v55  ;;  %v499_v63 = vadd.f32 %v497_v52, %v484_v4  ;;  %v556_v35 = vmul.f32 %v551_v11, %v546_v0  ;;  %v557_v36 = vmul.f32 %v555_v6, %v547_v15 }
 0x221   : > { %v578_v37 = vmul.f32 %v576_v17, %v870_v21  ;;  %v579_v38 = vmul.f32 %v577_v18, %v879_v28  ;;  %v571_v44 = vmul.f32 %v566_v26, %v561_v31  ;;  %v572_v2 = vmul.f32 %v570_v27, %v562_v8 }
 0x222   : > { %v513_v53 = vadd.f32 %v511_v1, %v498_v54  ;;  %v514_v12 = vadd.f32 %v512_v10, %v499_v63  ;;  %v585_v9 = vmul.f32 %v583_v40, %v873_v22  ;;  %v586_v20 = vmul.f32 %v584_v41, %v882_v29 }
 0x223   : > { %v592_v21 = vmul.f32 %v590_v19, %v876_v23  ;;  %v593_v28 = vmul.f32 %v591_v45, %v885_v30  ;;  %v599_v51 = vmul.f32 %v597_v47, %v890_v33  ;;  %v600_v52 = vmul.f32 %v598_v48, %v895_v39 }
 0x224   : > { %v528_v24 = vadd.f32 %v526_v13, %v513_v53  ;;  %v529_v25 = vadd.f32 %v527_v14, %v514_v12 }
 0x226   : > { %v543_v32 = vadd.f32 %v541_v16, %v528_v24  ;;  %v544_v34 = vadd.f32 %v542_v7, %v529_v25 }
 0x228   : > { %v558_v42 = vadd.f32 %v556_v35, %v543_v32  ;;  %v559_v43 = vadd.f32 %v557_v36, %v544_v34 }
 0x22a   : > { %v573_v3 = vadd.f32 %v571_v44, %v558_v42  ;;  %v574_v46 = vadd.f32 %v572_v2, %v559_v43 }
 0x22c   : > { %v580_v49 = vadd.f32 %v578_v37, %v573_v3  ;;  %v581_v50 = vadd.f32 %v579_v38, %v574_v46 }
 0x22e   : > { %v587_v55 = vadd.f32 %v585_v9, %v580_v49  ;;  %v588_v4 = vadd.f32 %v586_v20, %v581_v50 }
 0x230   : > { %v594_v22 = vadd.f32 %v592_v21, %v587_v55  ;;  %v595_v56 = vadd.f32 %v593_v28, %v588_v4 }
 0x232   : > { %v601_v29 = vadd.f32 %v599_v51, %v594_v22  ;;  %v602_v57 = vadd.f32 %v600_v52, %v595_v56 }
 0x234   : > { %v603_v23 = vmax.f32 %v601_v29, 0.0  ;;  %v604_v58 = vmax.f32 %v602_v57, 0.0 }
 0x236   : > { %605 = vst [vmem:[%s185_s26] sm:$0xff] %v603_v23  ;;  %606 = vst [vmem:[%s185_s26 + $0x8] sm:$0xff] %v604_v58 }
 0x237 PF: > { %s14_s12 = sadd.s32 1, %s758_s12  }
 0x238   : > { %p11_p3 = scmp.ge.s32.totalorder %s14_s12, 4  }
 0x23a   :  { %13 = sbr.rel (!%p11_p3) target bundleno = 1 (0x1), region = 96 }
 0x241   :  { %628 = vsyncpa [#allocation3], 1 }
 0x242   :  { %630 = vsyncpa [#allocation3 + $0x1], 1 }

</bundles_post_ra>
